<compile_context>
chip_gen: v7x
topology: tpu7x:2x2x1
jax: 0.10.0
libtpu: 0.0.40
codegen_flags: <defaults>
</compile_context>

<pallas_src>
import jax
import jax.numpy as jnp
from jax.experimental import pallas as pl
from jax.experimental.pallas import tpu as pltpu

# ---- static configuration ----------------------------------------------------
HIDDEN = 32                       # C
NUM_HEADS = 4                     # H
HEAD_DIM = HIDDEN // NUM_HEADS    # Dh = 8
SCALE = HEAD_DIM ** (-0.5)
LN_EPS = 1e-5
SEQ = 8                           # N
BATCH = 2                         # B
TOKENS = BATCH * SEQ              # T  = 16
HT = NUM_HEADS * TOKENS           # 64
C3 = 3 * HIDDEN                   # 96
NEG_INF = -1e9

# every block size is a power of two -> in-kernel index math uses shifts/ands
LOG2_DH = HEAD_DIM.bit_length() - 1     # 3
LOG2_T = TOKENS.bit_length() - 1        # 4
LOG2_SEQ = SEQ.bit_length() - 1         # 3


def attention_kernel(x_ref, wqkv_ref, vecs_ref, wp_ref, o_ref):
    """Whole (B*N, C) token slab in one shot; 5 MXU dots total."""
    f32 = jnp.float32

    x = x_ref[...]                                                    # (T, C)

    # ---- dot 1: fused QKV projection (packed lane-dense 96-wide RHS) --------
    qkv = jnp.dot(x, wqkv_ref[...], preferred_element_type=f32)       # (T, 3C)

    # ---- dot 2: fused per-head LayerNorm stats for q and k ------------------
    # Block-diagonal averaging matrix over Dh-channel blocks, built in-kernel.
    br = jnp.right_shift(jax.lax.broadcasted_iota(jnp.int32, (C3, C3), 0), LOG2_DH)
    bc = jnp.right_shift(jax.lax.broadcasted_iota(jnp.int32, (C3, C3), 1), LOG2_DH)
    mavg = jnp.where(br == bc, 1.0 / HEAD_DIM, 0.0)                   # (3C, 3C)

    stacked = jnp.concatenate([qkv, qkv * qkv], axis=0)               # (2T, 3C)
    mom = jnp.dot(stacked, mavg, preferred_element_type=f32)          # (2T, 3C)
    mu = mom[:TOKENS, :]
    var = jnp.maximum(mom[TOKENS:, :] - mu * mu, 0.0)
    g = vecs_ref[0:1, :]        # [g_q*scale | g_k | 1] tiled per head
    b = vecs_ref[1:2, :]        # [b_q*scale | b_k | 0] tiled per head
    normed = (qkv - mu) * jax.lax.rsqrt(var + LN_EPS) * g + b         # (T, 3C)

    qn = normed[:, :HIDDEN]               # scaled + normalized Q     (T, C)
    kn = normed[:, HIDDEN:2 * HIDDEN]     # normalized K              (T, C)
    v = qkv[:, 2 * HIDDEN:]               # raw V (never normalized)  (T, C)

    # ---- replicate K/V over heads + head-channel mask (no extra dots) -------
    # rows ordered (head, token); selector built in-kernel from iota compares.
    rh = jnp.right_shift(jax.lax.broadcasted_iota(jnp.int32, (HT, C3), 0), LOG2_T)
    ch = jnp.right_shift(
        jnp.bitwise_and(jax.lax.broadcasted_iota(jnp.int32, (HT, C3), 1), HIDDEN - 1),
        LOG2_DH)
    sel = jnp.where(rh == ch, 1.0, 0.0)                               # (HT, 3C)

    kv1 = jnp.concatenate([kn, v, jnp.ones_like(v)], axis=1)          # (T, 3C)
    kvm = (jnp.broadcast_to(kv1[None], (NUM_HEADS, TOKENS, C3))
           .reshape(HT, C3)) * sel                                    # (HT, 3C)
    kexp = kvm[:, :HIDDEN]       # replicated, head-masked K          (HT, C)
    vm = kvm[:, HIDDEN:]         # [head-masked V | head selector]    (HT, 2C)

    # ---- dot 3: every (batch, head) score block at once ----------------------
    s = jax.lax.dot_general(qn, kexp, (((1,), (1,)), ((), ())),
                            preferred_element_type=f32)               # (T, HT)

    # cross-batch additive mask (no row can be fully masked with this B/N)
    qb = jnp.right_shift(jax.lax.broadcasted_iota(jnp.int32, (TOKENS, HT), 0), LOG2_SEQ)
    kb = jnp.right_shift(
        jnp.bitwise_and(jax.lax.broadcasted_iota(jnp.int32, (TOKENS, HT), 1), TOKENS - 1),
        LOG2_SEQ)
    s = s + jnp.where(qb == kb, 0.0, NEG_INF)

    # Shared row max is exact per head segment (softmax is shift-invariant);
    # QK-LayerNorm bounds the score spread so segments do not underflow, and
    # the denominator clamp below turns any pathological underflow into 0
    # rather than NaN/Inf.
    s = s - jnp.max(s, axis=-1, keepdims=True)
    e = jnp.exp(s)

    # ---- dot 4: fused numerator (heads already merged) + per-head denom -----
    nd = jnp.dot(e, vm, preferred_element_type=f32)                   # (T, 2C)
    num = nd[:, :HIDDEN]
    den = jnp.maximum(nd[:, HIDDEN:], 1e-30)
    ctx = num * pl.reciprocal(den, approx=True)                       # (T, C)

    # ---- dot 5: output projection --------------------------------------------
    bp = vecs_ref[2:3, :HIDDEN]
    out = jnp.dot(ctx, wp_ref[...], preferred_element_type=f32) + bp
    o_ref[...] = out.astype(o_ref.dtype)


@jax.jit
def attention_forward(x, w_qkv, g_q, b_q, g_k, b_k, w_proj, b_proj):
    B, N, C = x.shape
    T = B * N

    x2 = x.reshape(T, C).astype(jnp.float32)

    # Packed lane-dense QKV RHS: (C, 3C) = [Wq^T | Wk^T | Wv^T] -> one MXU dot.
    wqkv_packed = w_qkv.astype(jnp.float32).T                         # (C, 3C)
    wp = w_proj.astype(jnp.float32).T                                 # (C, C)

    # Per-lane LN affine for the fused (q|k|v) lane layout; softmax scale is
    # folded into the q-norm gamma/beta. v lanes get identity params (unused).
    gq = jnp.tile(g_q.astype(jnp.float32), NUM_HEADS) * SCALE
    bq = jnp.tile(b_q.astype(jnp.float32), NUM_HEADS) * SCALE
    gk = jnp.tile(g_k.astype(jnp.float32), NUM_HEADS)
    bk = jnp.tile(b_k.astype(jnp.float32), NUM_HEADS)
    ones = jnp.ones((C,), jnp.float32)
    zeros = jnp.zeros((C,), jnp.float32)
    g_full = jnp.concatenate([gq, gk, ones])                          # (3C,)
    b_full = jnp.concatenate([bq, bk, zeros])                         # (3C,)
    bp_pad = jnp.concatenate([b_proj.astype(jnp.float32), zeros, zeros])
    vecs = jnp.stack([g_full, b_full, bp_pad], axis=0)                # (3, 3C)

    full = lambda shape: pl.BlockSpec(shape, lambda i: (0,) * len(shape))

    out = pl.pallas_call(
        attention_kernel,
        out_shape=jax.ShapeDtypeStruct((T, C), jnp.float32),
        grid_spec=pltpu.PrefetchScalarGridSpec(
            num_scalar_prefetch=0,
            grid=(1,),                    # whole batch in one invocation
            in_specs=[
                full((T, C)),             # token slab
                full((C, 3 * C)),         # packed [Wq^T | Wk^T | Wv^T]
                full((3, 3 * C)),         # [gamma | beta | proj-bias] lanes
                full((C, C)),             # W_proj^T
            ],
            out_specs=full((T, C)),       # natural-size output (no lane pad)
        ),
        compiler_params=pltpu.CompilerParams(
            dimension_semantics=("arbitrary",)),
    )(x2, wqkv_packed, vecs, wp)

    return out.reshape(B, N, C).astype(x.dtype)


def reference_forward(x, w_qkv, g_q, b_q, g_k, b_k, w_proj, b_proj):
    """Plain-JAX reference mirroring the PyTorch forward."""
    B, N, C = x.shape
    qkv = x @ w_qkv.T                                                 # (B,N,3C)
    qkv = qkv.reshape(B, N, 3, NUM_HEADS, HEAD_DIM).transpose(2, 0, 3, 1, 4)
    q, k, v = qkv[0], qkv[1], qkv[2]                                  # (B,H,N,Dh)

    def ln(t, g, b):
        m = jnp.mean(t, axis=-1, keepdims=True)
        s = jnp.mean(jnp.square(t - m), axis=-1, keepdims=True)
        return (t - m) / jnp.sqrt(s + LN_EPS) * g + b

    q = ln(q, g_q, b_q)
    k = ln(k, g_k, b_k)
    q = q * SCALE
    attn = jnp.einsum("bhqd,bhkd->bhqk", q, k)
    attn = jax.nn.softmax(attn, axis=-1)
    out = jnp.einsum("bhqk,bhkd->bhqd", attn, v)
    out = out.transpose(0, 2, 1, 3).reshape(B, N, C)
    return out @ w_proj.T + b_proj


if __name__ == "__main__":
    key = jax.random.PRNGKey(0)
    kx, k1, k2, k3, k4, k5, k6, k7 = jax.random.split(key, 8)

    x = jax.random.normal(kx, (BATCH, SEQ, HIDDEN), dtype=jnp.float32)

    # deterministic synthetic parameters (nn.Linear / nn.LayerNorm shapes)
    w_qkv = jax.random.normal(k1, (3 * HIDDEN, HIDDEN), dtype=jnp.float32) * 0.1
    w_proj = jax.random.normal(k2, (HIDDEN, HIDDEN), dtype=jnp.float32) * 0.1
    b_proj = jax.random.normal(k3, (HIDDEN,), dtype=jnp.float32) * 0.05
    # non-trivial LayerNorm affine params to exercise the folded-scale path
    g_q = 1.0 + 0.1 * jax.random.normal(k4, (HEAD_DIM,), dtype=jnp.float32)
    b_q = 0.05 * jax.random.normal(k5, (HEAD_DIM,), dtype=jnp.float32)
    g_k = 1.0 + 0.1 * jax.random.normal(k6, (HEAD_DIM,), dtype=jnp.float32)
    b_k = 0.05 * jax.random.normal(k7, (HEAD_DIM,), dtype=jnp.float32)

    out = attention_forward(x, w_qkv, g_q, b_q, g_k, b_k, w_proj, b_proj)
    out = jax.block_until_ready(out)

    ref = reference_forward(x, w_qkv, g_q, b_q, g_k, b_k, w_proj, b_proj)
    assert out.shape == (BATCH, SEQ, HIDDEN)
    assert jnp.allclose(out, ref, rtol=1e-2, atol=1e-2), "mismatch vs reference"

    print("KERNEL_OK")
</pallas_src>

<mosaic_0001>
module attributes {stable_mosaic.version = 11 : i64} {
  func.func @attention_kernel(%arg0: i32, %arg1: memref<16x32xf32, #tpu.memory_space<vmem>>, %arg2: memref<32x96xf32, #tpu.memory_space<vmem>>, %arg3: memref<3x96xf32, #tpu.memory_space<vmem>>, %arg4: memref<32x32xf32, #tpu.memory_space<vmem>>, %arg5: memref<16x32xf32, #tpu.memory_space<vmem>>) attributes {dimension_semantics = [#tpu.dimension_semantics<arbitrary>], iteration_bounds = array<i64: 1>, scalar_prefetch = 0 : i64, scratch_operands = 0 : i64, tpu.core_type = #tpu.core_type<tc>, window_params = [{pipeline_mode = #tpu.pipeline_mode<synchronous>, transform_indices = @transform_0, window_bounds = array<i64: 16, 32>}, {pipeline_mode = #tpu.pipeline_mode<synchronous>, transform_indices = @transform_1, window_bounds = array<i64: 32, 96>}, {pipeline_mode = #tpu.pipeline_mode<synchronous>, transform_indices = @transform_2, window_bounds = array<i64: 3, 96>}, {pipeline_mode = #tpu.pipeline_mode<synchronous>, transform_indices = @transform_3, window_bounds = array<i64: 32, 32>}, {pipeline_mode = #tpu.pipeline_mode<synchronous>, transform_indices = @transform_4, window_bounds = array<i64: 16, 32>}]} {
    %c0 = arith.constant 0 : index
    %c0_0 = arith.constant 0 : index
    %0 = vector.load %arg1[%c0, %c0_0] : memref<16x32xf32, #tpu.memory_space<vmem>>, vector<16x32xf32>
    %c0_1 = arith.constant 0 : index
    %c0_2 = arith.constant 0 : index
    %1 = vector.load %arg2[%c0_1, %c0_2] : memref<32x96xf32, #tpu.memory_space<vmem>>, vector<32x96xf32>
    %cst = arith.constant dense<0.000000e+00> : vector<16x96xf32>
    %2 = tpu.matmul %0, %1, %cst {dimension_numbers = #tpu.dot_dimension_numbers<[1], [0], [0], [1], [0, 0, 1, 1], [], []>} : vector<16x32xf32>, vector<32x96xf32>, vector<16x96xf32> -> vector<16x96xf32>
    %3 = tpu.iota {dimensions = array<i32: 0>} : vector<96x96xi32>
    %c3_i32 = arith.constant 3 : i32
    %4 = vector.broadcast %c3_i32 : i32 to vector<96x96xi32>
    %5 = arith.shrsi %3, %4 : vector<96x96xi32>
    %6 = tpu.iota {dimensions = array<i32: 1>} : vector<96x96xi32>
    %c3_i32_3 = arith.constant 3 : i32
    %7 = vector.broadcast %c3_i32_3 : i32 to vector<96x96xi32>
    %8 = arith.shrsi %6, %7 : vector<96x96xi32>
    %9 = arith.cmpi eq, %5, %8 : vector<96x96xi32>
    %cst_4 = arith.constant 1.250000e-01 : f32
    %cst_5 = arith.constant 0.000000e+00 : f32
    %10 = vector.broadcast %cst_4 : f32 to vector<96x96xf32>
    %11 = vector.broadcast %cst_5 : f32 to vector<96x96xf32>
    %12 = arith.select %9, %10, %11 : vector<96x96xi1>, vector<96x96xf32>
    %13 = arith.mulf %2, %2 : vector<16x96xf32>
    %14 = tpu.concatenate %2, %13 in 0 : vector<16x96xf32>, vector<16x96xf32> -> vector<32x96xf32>
    %cst_6 = arith.constant dense<0.000000e+00> : vector<32x96xf32>
    %15 = tpu.matmul %14, %12, %cst_6 {dimension_numbers = #tpu.dot_dimension_numbers<[1], [0], [0], [1], [0, 0, 1, 1], [], []>} : vector<32x96xf32>, vector<96x96xf32>, vector<32x96xf32> -> vector<32x96xf32>
    %16 = vector.extract_strided_slice %15 {offsets = [0, 0], sizes = [16, 96], strides = [1, 1]} : vector<32x96xf32> to vector<16x96xf32>
    %17 = vector.extract_strided_slice %15 {offsets = [16, 0], sizes = [16, 96], strides = [1, 1]} : vector<32x96xf32> to vector<16x96xf32>
    %18 = arith.mulf %16, %16 : vector<16x96xf32>
    %19 = arith.subf %17, %18 : vector<16x96xf32>
    %cst_7 = arith.constant 0.000000e+00 : f32
    %20 = vector.broadcast %cst_7 : f32 to vector<16x96xf32>
    %21 = arith.maximumf %19, %20 : vector<16x96xf32>
    %c0_8 = arith.constant 0 : index
    %c0_9 = arith.constant 0 : index
    %22 = vector.load %arg3[%c0_8, %c0_9] : memref<3x96xf32, #tpu.memory_space<vmem>>, vector<1x96xf32>
    %c1 = arith.constant 1 : index
    %c0_10 = arith.constant 0 : index
    %23 = vector.load %arg3[%c1, %c0_10] : memref<3x96xf32, #tpu.memory_space<vmem>>, vector<1x96xf32>
    %24 = arith.subf %2, %16 : vector<16x96xf32>
    %cst_11 = arith.constant 9.99999974E-6 : f32
    %25 = vector.broadcast %cst_11 : f32 to vector<16x96xf32>
    %26 = arith.addf %21, %25 : vector<16x96xf32>
    %27 = math.rsqrt %26 : vector<16x96xf32>
    %28 = arith.mulf %24, %27 : vector<16x96xf32>
    %29 = vector.broadcast %22 : vector<1x96xf32> to vector<16x96xf32>
    %30 = arith.mulf %28, %29 : vector<16x96xf32>
    %31 = vector.broadcast %23 : vector<1x96xf32> to vector<16x96xf32>
    %32 = arith.addf %30, %31 : vector<16x96xf32>
    %33 = vector.extract_strided_slice %32 {offsets = [0, 0], sizes = [16, 32], strides = [1, 1]} : vector<16x96xf32> to vector<16x32xf32>
    %34 = vector.extract_strided_slice %32 {offsets = [0, 32], sizes = [16, 32], strides = [1, 1]} : vector<16x96xf32> to vector<16x32xf32>
    %35 = vector.extract_strided_slice %2 {offsets = [0, 64], sizes = [16, 32], strides = [1, 1]} : vector<16x96xf32> to vector<16x32xf32>
    %36 = tpu.iota {dimensions = array<i32: 0>} : vector<64x96xi32>
    %c4_i32 = arith.constant 4 : i32
    %37 = vector.broadcast %c4_i32 : i32 to vector<64x96xi32>
    %38 = arith.shrsi %36, %37 : vector<64x96xi32>
    %39 = tpu.iota {dimensions = array<i32: 1>} : vector<64x96xi32>
    %c31_i32 = arith.constant 31 : i32
    %40 = vector.broadcast %c31_i32 : i32 to vector<64x96xi32>
    %41 = arith.andi %39, %40 : vector<64x96xi32>
    %c3_i32_12 = arith.constant 3 : i32
    %42 = vector.broadcast %c3_i32_12 : i32 to vector<64x96xi32>
    %43 = arith.shrsi %41, %42 : vector<64x96xi32>
    %44 = arith.cmpi eq, %38, %43 : vector<64x96xi32>
    %cst_13 = arith.constant 1.000000e+00 : f32
    %cst_14 = arith.constant 0.000000e+00 : f32
    %45 = vector.broadcast %cst_13 : f32 to vector<64x96xf32>
    %46 = vector.broadcast %cst_14 : f32 to vector<64x96xf32>
    %47 = arith.select %44, %45, %46 : vector<64x96xi1>, vector<64x96xf32>
    %cst_15 = arith.constant 1.000000e+00 : f32
    %48 = vector.broadcast %cst_15 : f32 to vector<16x32xf32>
    %49 = tpu.concatenate %34, %35, %48 in 1 : vector<16x32xf32>, vector<16x32xf32>, vector<16x32xf32> -> vector<16x96xf32>
    %50 = vector.shape_cast %49 : vector<16x96xf32> to vector<1x16x96xf32>
    %51 = vector.shape_cast %50 : vector<1x16x96xf32> to vector<1x16x96xf32>
    %52 = vector.broadcast %51 : vector<1x16x96xf32> to vector<4x16x96xf32>
    %53 = vector.shape_cast %52 : vector<4x16x96xf32> to vector<64x96xf32>
    %54 = arith.mulf %53, %47 : vector<64x96xf32>
    %55 = vector.extract_strided_slice %54 {offsets = [0, 0], sizes = [64, 32], strides = [1, 1]} : vector<64x96xf32> to vector<64x32xf32>
    %56 = vector.extract_strided_slice %54 {offsets = [0, 32], sizes = [64, 64], strides = [1, 1]} : vector<64x96xf32> to vector<64x64xf32>
    %cst_16 = arith.constant dense<0.000000e+00> : vector<16x64xf32>
    %57 = tpu.matmul %33, %55, %cst_16 {dimension_numbers = #tpu.dot_dimension_numbers<[1], [1], [0], [0], [0, 0, 1, 0], [], []>} : vector<16x32xf32>, vector<64x32xf32>, vector<16x64xf32> -> vector<16x64xf32>
    %58 = tpu.iota {dimensions = array<i32: 0>} : vector<16x64xi32>
    %c3_i32_17 = arith.constant 3 : i32
    %59 = vector.broadcast %c3_i32_17 : i32 to vector<16x64xi32>
    %60 = arith.shrsi %58, %59 : vector<16x64xi32>
    %61 = tpu.iota {dimensions = array<i32: 1>} : vector<16x64xi32>
    %c15_i32 = arith.constant 15 : i32
    %62 = vector.broadcast %c15_i32 : i32 to vector<16x64xi32>
    %63 = arith.andi %61, %62 : vector<16x64xi32>
    %c3_i32_18 = arith.constant 3 : i32
    %64 = vector.broadcast %c3_i32_18 : i32 to vector<16x64xi32>
    %65 = arith.shrsi %63, %64 : vector<16x64xi32>
    %66 = arith.cmpi eq, %60, %65 : vector<16x64xi32>
    %cst_19 = arith.constant 0.000000e+00 : f32
    %cst_20 = arith.constant -1.000000e+09 : f32
    %67 = vector.broadcast %cst_19 : f32 to vector<16x64xf32>
    %68 = vector.broadcast %cst_20 : f32 to vector<16x64xf32>
    %69 = arith.select %66, %67, %68 : vector<16x64xi1>, vector<16x64xf32>
    %70 = arith.addf %57, %69 : vector<16x64xf32>
    %cst_21 = arith.constant dense<0xFF800000> : vector<16xf32>
    %71 = vector.multi_reduction <maximumf>, %70, %cst_21 [1] : vector<16x64xf32> to vector<16xf32>
    %72 = vector.shape_cast %71 : vector<16xf32> to vector<16x1xf32>
    %73 = vector.broadcast %72 : vector<16x1xf32> to vector<16x64xf32>
    %74 = arith.subf %70, %73 : vector<16x64xf32>
    %75 = math.exp %74 : vector<16x64xf32>
    %cst_22 = arith.constant dense<0.000000e+00> : vector<16x64xf32>
    %76 = tpu.matmul %75, %56, %cst_22 {dimension_numbers = #tpu.dot_dimension_numbers<[1], [0], [0], [1], [0, 0, 1, 1], [], []>} : vector<16x64xf32>, vector<64x64xf32>, vector<16x64xf32> -> vector<16x64xf32>
    %77 = vector.extract_strided_slice %76 {offsets = [0, 0], sizes = [16, 32], strides = [1, 1]} : vector<16x64xf32> to vector<16x32xf32>
    %78 = vector.extract_strided_slice %76 {offsets = [0, 32], sizes = [16, 32], strides = [1, 1]} : vector<16x64xf32> to vector<16x32xf32>
    %cst_23 = arith.constant 1.000000e-30 : f32
    %79 = vector.broadcast %cst_23 : f32 to vector<16x32xf32>
    %80 = arith.maximumf %78, %79 : vector<16x32xf32>
    %81 = tpu.reciprocal %80 {approx = true} : vector<16x32xf32> -> vector<16x32xf32>
    %82 = arith.mulf %77, %81 : vector<16x32xf32>
    %c2 = arith.constant 2 : index
    %c0_24 = arith.constant 0 : index
    %83 = vector.load %arg3[%c2, %c0_24] : memref<3x96xf32, #tpu.memory_space<vmem>>, vector<1x32xf32>
    %c0_25 = arith.constant 0 : index
    %c0_26 = arith.constant 0 : index
    %84 = vector.load %arg4[%c0_25, %c0_26] : memref<32x32xf32, #tpu.memory_space<vmem>>, vector<32x32xf32>
    %cst_27 = arith.constant dense<0.000000e+00> : vector<16x32xf32>
    %85 = tpu.matmul %82, %84, %cst_27 {dimension_numbers = #tpu.dot_dimension_numbers<[1], [0], [0], [1], [0, 0, 1, 1], [], []>} : vector<16x32xf32>, vector<32x32xf32>, vector<16x32xf32> -> vector<16x32xf32>
    %86 = vector.broadcast %83 : vector<1x32xf32> to vector<16x32xf32>
    %87 = arith.addf %85, %86 : vector<16x32xf32>
    %c0_28 = arith.constant 0 : index
    %c0_29 = arith.constant 0 : index
    %88 = vector.load %arg5[%c0_28, %c0_29] : memref<16x32xf32, #tpu.memory_space<vmem>>, vector<16x32xf32>
    tpu.vector_store %arg5[%c0_28, %c0_29], %87 {strides = array<i32>} : memref<16x32xf32, #tpu.memory_space<vmem>>, vector<16x32xf32>,
    return
  }
  func.func @transform_0(%arg0: i32) -> (i32, i32) {
    %c0_i32 = arith.constant 0 : i32
    %c0_i32_0 = arith.constant 0 : i32
    %c0_i32_1 = arith.constant 0 : i32
    return %c0_i32, %c0_i32_0 : i32, i32
  }
  func.func @transform_1(%arg0: i32) -> (i32, i32) {
    %c0_i32 = arith.constant 0 : i32
    %c0_i32_0 = arith.constant 0 : i32
    %c0_i32_1 = arith.constant 0 : i32
    return %c0_i32, %c0_i32_0 : i32, i32
  }
  func.func @transform_2(%arg0: i32) -> (i32, i32) {
    %c0_i32 = arith.constant 0 : i32
    %c0_i32_0 = arith.constant 0 : i32
    %c0_i32_1 = arith.constant 0 : i32
    return %c0_i32, %c0_i32_0 : i32, i32
  }
  func.func @transform_3(%arg0: i32) -> (i32, i32) {
    %c0_i32 = arith.constant 0 : i32
    %c0_i32_0 = arith.constant 0 : i32
    %c0_i32_1 = arith.constant 0 : i32
    return %c0_i32, %c0_i32_0 : i32, i32
  }
  func.func @transform_4(%arg0: i32) -> (i32, i32) {
    %c0_i32 = arith.constant 0 : i32
    %c0_i32_0 = arith.constant 0 : i32
    %c0_i32_1 = arith.constant 0 : i32
    return %c0_i32, %c0_i32_0 : i32, i32
  }
}

</mosaic_0001>

<bundles_post_ra>
// kernel: attention_forward.1
= control target key start
LH: loop header
LB: loop body
LE: loop exit
PB: predicated region body
PF: predicated region fallthrough
CT: control target
= control target key end

     0   :  { %vm24_vm0 = vcmask 261120   ;;  %v106_v3 = vlaneseq  ;;  %s1226_s0 = inlined_call_operand.vmem [shape: f32[16,32], index: 0, kind: input, shape index: {}]   ;;  %s1227_s1 = inlined_call_operand.vmem [shape: f32[32,96], index: 1, kind: input, shape index: {}]   ;;  %s1228_s2 = inlined_call_operand.vmem [shape: f32[3,96], index: 2, kind: input, shape index: {}]   ;;  %s1229_s3 = inlined_call_operand.vmem [shape: f32[32,32], index: 3, kind: input, shape index: {}]   ;;  %s1230_s4 = inlined_call_operand.hbm [shape: f32[16,32], index: 4, kind: output, shape index: {}]  }
   0x1   :  { %v20_v0 = vld [vmem:[%s1227_s1] sm:$0xff]  ;;  %v21_v1 = vld [vmem:[%s1227_s1 + $0x8] sm:$0xff]  ;;  %v22_v2 = vld [vmem:[%s1227_s1 + $0x10] sm:$0xff] }
   0x2   :  { %v860_v4 = vpack.c.bf16 %v21_v1, %v20_v0  ;;  %v23_v5 = vld [vmem:[%s1227_s1 + $0x18] sm:$0xff]  ;;  %v18_v6 = vld [vmem:[%s1226_s0] sm:$0xff]  ;;  %v1051_v8 = vshrl.u32 %v106_v3, 7  ;;  %v1053_v9 = vand.u32 127, %v106_v3 }
   0x3   :  { %v864_v7 = vpack.c.bf16 %v23_v5, %v22_v2  ;;  %778 = vmatprep.mubr.msk.f32.mxu0 %vm24_vm0, %v18_v6 }
   0x4   :  { %9 = vsyncpa [#allocation3], 0  ;;  %861 = vmatprep.subr.bf16.mxu0 %v860_v4  ;;  %v1056_v10 = vadd.s32 8, %v1051_v8  ;;  %v119_v11 = vshra.s32 %v1051_v8, 3  ;;  %v133_v12 = vshra.s32 %v1053_v9, 3  ;;  %v1061_v13 = vadd.s32 16, %v1051_v8 }
   0x5   :  { %863 = vmatpush3.bf16.msra.mxu0 %v860_v4  ;;  %v1064_v14 = vadd.s32 24, %v1051_v8  ;;  %v1067_v15 = vadd.s32 32, %v1051_v8  ;;  %v1070_v16 = vadd.s32 40, %v1051_v8  ;;  %v1073_v17 = vadd.s32 48, %v1051_v8  ;;  %v19_v24 = vld [vmem:[%s1226_s0 + $0x8] sm:$0xff]  ;;  %s1004_s0 = smov 96  }
   0x6   :  { %865 = vmatprep.subr.bf16.mxu0 %v864_v7  ;;  %v120_v18 = vshra.s32 %v1056_v10, 3  ;;  %vm1078_vm1 = vcmp.eq.s32.totalorder %v119_v11, %v133_v12  ;;  %v121_v20 = vshra.s32 %v1061_v13, 3  ;;  %v1096_v26 = vadd.s32 56, %v1051_v8  ;;  %v705_v63 = vld [vmem:[%s1228_s2] ss:$0 sm:$0xff]  ;;  %s1007_s13 = smov [#allocation2]  }
   0x7   :  { %v122_v21 = vshra.s32 %v1064_v14, 3  ;;  %v123_v22 = vshra.s32 %v1067_v15, 3  ;;  %v124_v23 = vshra.s32 %v1070_v16, 3  ;;  %v125_v28 = vshra.s32 %v1073_v17, 3  ;;  %v706_v2 = vld [vmem:[%s1228_s2 + $0x1] ss:$0 sm:$0xff] }
   0x8   :  { %vm135_vm2 = vcmp.eq.s32.totalorder %v120_v18, %v133_v12  ;;  %vm1091_vm3 = vcmp.eq.s32.totalorder %v121_v20, %v133_v12  ;;  %v1003_v29 = vmov 0.125|0.125   ;;  %v126_v32 = vshra.s32 %v1096_v26, 3  ;;  %s676_s14 = sshll.u32 %s1007_s13, 4  ;;  %s677_s14 = int_to_ptr.vmem [resolvable:$true] %s676_s14 }
   0x9   :  { %867 = vmatpush3.bf16.msra.mxu0 %v864_v7  ;;  %vm868_vm4 = vmpackc.low %vm135_vm2, %vm1078_vm1  ;;  %vm1100_vm5 = vcmp.eq.s32.totalorder %v122_v21, %v133_v12  ;;  %vm1109_vm7 = vcmp.eq.s32.totalorder %v123_v22, %v133_v12  ;;  %vm1113_vm8 = vcmp.eq.s32.totalorder %v124_v23, %v133_v12  ;;  %v115_v33 = vadd.s32 64, %v1051_v8  ;;  %s979_s15 = scalar_lea.vmem %s677_s14, 256  ;;  %p984_p1 = scmp.lt.s32.totalorder %s677_s14, %s677_s14 }
   0xa   :  { %869 = vmatprep.subr.msk.bf16.mxu1 %vm868_vm4, %v1003_v29  ;;  %vm872_vm6 = vmpackc.low %vm1100_vm5, %vm1091_vm3  ;;  %v116_v34 = vadd.s32 72, %v1051_v8  ;;  %vm1130_vm10 = vcmp.eq.s32.totalorder %v125_v28, %v133_v12  ;;  %v117_v36 = vadd.s32 80, %v1051_v8  ;;  %vm1135_vm11 = vcmp.eq.s32.totalorder %v126_v32, %v133_v12  ;;  %p980_p0 = scmp.ne.s32.totalorder %s677_s14, %s979_s15  ;;  %p985_p2 = scmp.lt.s32.totalorder %s979_s15, %s979_s15 }
   0xb   :  { %871 = vmatpush3.bf16.msk.msra.mxu1 %vm868_vm4, %v1003_v29  ;;  %vm876_vm9 = vmpackc.low %vm1113_vm8, %vm1109_vm7  ;;  %v127_v38 = vshra.s32 %v115_v33, 3  ;;  %v118_v40 = vadd.s32 88, %v1051_v8  ;;  %vm160_vm3 = vcmask 785408   ;;  %v294_v7 = vand.u32 31, %v1053_v9 }
   0xc   :  { %779 = vmatmul.mubr.msk.f32.vlgmr.msra.gmra.mrb[0].mxu0 %vm24_vm0, %v19_v24  ;;  %873 = vmatprep.subr.msk.bf16.mxu1 %vm872_vm6, %v1003_v29  ;;  %v128_v39 = vshra.s32 %v116_v34, 3  ;;  %vm880_vm12 = vmpackc.low %vm1135_vm11, %vm1130_vm10  ;;  %v129_v41 = vshra.s32 %v117_v36, 3  ;;  %v288_v20 = vshra.s32 %v1061_v13, 4  ;;  %v286_v21 = vshra.s32 %v1051_v8, 4  ;;  %p986_p3 = por %p985_p2, %p984_p1 }
   0xd   :  { %vm142_vm13 = vcmp.eq.s32.totalorder %v127_v38, %v133_v12  ;;  %v130_v42 = vshra.s32 %v118_v40, 3  ;;  %v295_v19 = vshra.s32 %v294_v7, 3  ;;  %v287_v22 = vshra.s32 %v1056_v10, 4 }
   0xe   :  { %vm143_vm14 = vcmp.eq.s32.totalorder %v128_v39, %v133_v12  ;;  %vm144_vm1 = vcmp.eq.s32.totalorder %v129_v41, %v133_v12  ;;  %v293_v23 = vshra.s32 %v1096_v26, 4  ;;  %v289_v24 = vshra.s32 %v1064_v14, 4  ;;  %p987_p4 = pnand %p986_p3, %p980_p0 }
   0xf   :  { %875 = vmatpush3.bf16.msk.msra.mxu1 %vm872_vm6, %v1003_v29  ;;  %vm884_vm15 = vmpackc.low %vm143_vm14, %vm142_vm13  ;;  %vm145_vm2 = vcmp.eq.s32.totalorder %v130_v42, %v133_v12  ;;  %v291_v12 = vshra.s32 %v1070_v16, 4  ;;  %v290_v25 = vshra.s32 %v1067_v15, 4  ;;  %v292_v27 = vshra.s32 %v1073_v17, 4 }
  0x10   :  { %877 = vmatprep.subr.msk.bf16.mxu1 %vm876_vm9, %v1003_v29  ;;  %vm888_vm4 = vmpackc.low %vm145_vm2, %vm144_vm1  ;;  %vm328_vm5 = vcmask 523264   ;;  %vm298_vm7 = vcmp.eq.s32.totalorder %v288_v20, %v295_v19  ;;  %vm296_vm8 = vcmp.eq.s32.totalorder %v286_v21, %v295_v19  ;;  %vm299_vm10 = vcmp.eq.s32.totalorder %v289_v24, %v295_v19 }
  0x11   :  { %vm301_vm6 = vcmp.eq.s32.totalorder %v291_v12, %v295_v19  ;;  %vm297_vm11 = vcmp.eq.s32.totalorder %v287_v22, %v295_v19  ;;  %vm302_vm13 = vcmp.eq.s32.totalorder %v292_v27, %v295_v19  ;;  %v1005_v14 = vmov 0.0   ;;  %vm893_vm14 = vmpackc.low %vm24_vm0, %vm24_vm0 }
  0x12   :  { %v306_v26 = vsel %vm298_vm7, 1.0, %v1005_v14  ;;  %v304_v15 = vsel %vm296_vm8, 1.0, %v1005_v14  ;;  %v309_v17 = vsel %vm301_vm6, 1.0, %v1005_v14  ;;  %v307_v33 = vsel %vm299_vm10, 1.0, %v1005_v14 }
  0x13   :  { %879 = vmatpush3.bf16.msk.msra.mxu1 %vm876_vm9, %v1003_v29  ;;  %vm303_vm9 = vcmp.eq.s32.totalorder %v293_v23, %v295_v19  ;;  %v305_v34 = vsel %vm297_vm11, 1.0, %v1005_v14  ;;  %v310_v36 = vsel %vm302_vm13, 1.0, %v1005_v14 }
  0x14   :  { %881 = vmatprep.subr.msk.bf16.mxu1 %vm880_vm12, %v1003_v29  ;;  %v311_v31 = vsel %vm303_vm9, 1.0, %v1005_v14 }
  0x17   :  { %883 = vmatpush3.bf16.msk.msra.mxu1 %vm880_vm12, %v1003_v29  ;;  %vm300_vm12 = vcmp.eq.s32.totalorder %v290_v25, %v295_v19 }
  0x18   :  { %885 = vmatprep.subr.msk.bf16.mxu1 %vm884_vm15, %v1003_v29  ;;  %v308_v35 = vsel %vm300_vm12, 1.0, %v1005_v14  ;;  %v580_v14 = vld [vmem:[%s1229_s3] sm:$0xff] }
  0x1b   :  { %887 = vmatpush3.bf16.msk.msra.mxu1 %vm884_vm15, %v1003_v29 }
  0x1c   :  { %889 = vmatprep.subr.msk.bf16.mxu1 %vm888_vm4, %v1003_v29 }
  0x1f   :  { %891 = vmatpush3.bf16.msk.msra.mxu1 %vm888_vm4, %v1003_v29 }
  0xdf   :  { %v780_v43 = vpop.f32.mrb[0].mxu0 }
  0xe0   :  { %v97_v44 = vpop.f32.mrb[1].mxu0  ;;  %v159_v46 = vmul.f32 %v780_v43, %v780_v43 }
  0xe1   :  { %v158_v45 = vmul.f32 %v97_v44, %v97_v44  ;;  %320 = vrot.lane.b32.xlu1 %v97_v44, %s1004_s0  ;;  %805 = vmatprep.mubr.msk.f32.mxu1 %vm160_vm3, %v97_v44 }
  0xe2   :  { %806 = vmatmul.mubr.msk.f32.vlgmr.msra.gmra.mrb[0].mxu1 %vm160_vm3, %v780_v43 }
  0xe3   :  { %808 = vmatprep.mubr.msk.f32.mxu1 %vm160_vm3, %v158_v45 }
  0xe5   :  { %322 = vrot.lane.b32.xlu1 %v780_v43, %s1004_s0 }
  0xe6   :  { %809 = vmatmul.mubr.msk.f32.gmra.mrb[2].mxu1 %vm160_vm3, %v159_v46 }
 0x153   :  { %v321_v28 = vpop.permute.xlu1 %320 }
 0x157   :  { %v323_v30 = vpop.permute.xlu1 %322 }
 0x1b5   :  { %v807_v47 = vpop.f32.mrb[0].mxu1 }
 0x1b6   :  { %v267_v48 = vsub.f32 %v780_v43, %v807_v47  ;;  %v239_v49 = vpop.f32.mrb[1].mxu1  ;;  %v259_v51 = vmul.f32 %v807_v47, %v807_v47 }
 0x1b7   :  { %v266_v50 = vsub.f32 %v97_v44, %v239_v49  ;;  %v258_v52 = vmul.f32 %v239_v49, %v239_v49 }
 0x1b9   :  { %v810_v53 = vpop.f32.mrb[2].mxu1 }
 0x1ba   :  { %v261_v54 = vsub.f32 %v810_v53, %v259_v51  ;;  %v249_v55 = vpop.f32.mrb[3].mxu1 }
 0x1bb   :  { %v260_v56 = vsub.f32 %v249_v55, %v258_v52 }
 0x1bc   :  { %v263_v57 = vmax.f32 %v261_v54, 0.0 }
 0x1bd   :  { %v262_v58 = vmax.f32 %v260_v56, 0.0 }
 0x1be   :  { %v269_v59 = vadd.f32 1e-05, %v263_v57 }
 0x1bf   :  { %v268_v60 = vadd.f32 1e-05, %v262_v58 }
 0x1c0   :  { %967 = vrsqrt.f32 %v269_v59 }
 0x1c1   :  { %969 = vrsqrt.f32 %v268_v60 }
 0x1ca   :  { %v968_v61 = vpop.eup %967 }
 0x1cb   :  { %v970_v62 = vpop.eup %969  ;;  %v273_v0 = vmul.f32 %v968_v61, %v267_v48 }
 0x1cc   :  { %v272_v1 = vmul.f32 %v970_v62, %v266_v50 }
 0x1cd   :  { %v279_v4 = vmul.f32 %v705_v63, %v273_v0 }
 0x1ce   :  { %v278_v3 = vmul.f32 %v705_v63, %v272_v1  ;;  %v339_v63 = vand.u32 15, %v1053_v9  ;;  %v1006_v1 = vmov -1e+09  }
 0x1cf   :  { %v1159_v6 = vadd.f32 %v706_v2, %v279_v4 }
 0x1d0   :  { %v284_v5 = vadd.f32 %v706_v2, %v278_v3  ;;  %v340_v0 = vshra.s32 %v339_v63, 3 }
 0x1d2   :  { %314 = vrot.lane.b32.xlu0 %v284_v5, %s1004_s0  ;;  %827 = vmatprep.mubr.msk.f32.mxu0 %vm24_vm0, %v284_v5  ;;  %vm342_vm15 = vcmp.eq.s32.totalorder %v120_v18, %v340_v0  ;;  %vm341_vm1 = vcmp.eq.s32.totalorder %v119_v11, %v340_v0 }
 0x1d3   :  { %v344_v2 = vsel %vm342_vm15, 0.0, %v1006_v1  ;;  %v343_v3 = vsel %vm341_vm1, 0.0, %v1006_v1 }
 0x1d6   :  { %316 = vrot.lane.b32.xlu0 %v1159_v6, %s1004_s0 }
 0x244   :  { %v315_v29 = vpop.permute.xlu0 %314 }
 0x245   :  { %v326_v13 = vsel %vm24_vm0, %v315_v29, %v321_v28 }
 0x246   :  { %v329_v16 = vsel %vm328_vm5, %v326_v13, 1.0 }
 0x247   :  { %v333_v39 = vmul.f32 %v329_v16, %v306_v26  ;;  %v331_v40 = vmul.f32 %v329_v16, %v304_v15  ;;  %v335_v45 = vmul.f32 %v329_v16, %v308_v35  ;;  %v337_v46 = vmul.f32 %v329_v16, %v310_v36  ;;  %v581_v26 = vld [vmem:[%s1229_s3 + $0x8] sm:$0xff] }
 0x248   :  { %v317_v32 = vpop.permute.xlu0 %316  ;;  %v932_v15 = vpack.c.bf16 %v581_v26, %v580_v14 }
 0x249   :  { %v327_v37 = vsel %vm24_vm0, %v317_v32, %v323_v30  ;;  %v582_v30 = vld [vmem:[%s1229_s3 + $0x10] sm:$0xff] }
 0x24a   :  { %v330_v38 = vsel %vm328_vm5, %v327_v37, 1.0 }
 0x24b   :  { %v336_v41 = vmul.f32 %v330_v38, %v309_v17  ;;  %v338_v42 = vmul.f32 %v330_v38, %v311_v31  ;;  %v334_v43 = vmul.f32 %v330_v38, %v307_v33  ;;  %v332_v44 = vmul.f32 %v330_v38, %v305_v34  ;;  %v583_v17 = vld [vmem:[%s1229_s3 + $0x18] sm:$0xff] }
 0x24c   :  { %v936_v32 = vpack.c.bf16 %v583_v17, %v582_v30 }
 0x24d   :  { %v952_v47 = vpack.i.bf16 %v334_v43, %v333_v39  ;;  %v947_v48 = vpack.i.bf16 %v332_v44, %v331_v40  ;;  %v892_v49 = vpack.c.bf16 %v332_v44, %v331_v40  ;;  %v904_v50 = vpack.c.bf16 %v336_v41, %v335_v45 }
 0x24e   :  { %v910_v51 = vpack.c.bf16 %v338_v42, %v337_v46  ;;  %v962_v52 = vpack.i.bf16 %v338_v42, %v337_v46  ;;  %v957_v53 = vpack.i.bf16 %v336_v41, %v335_v45  ;;  %v898_v54 = vpack.c.bf16 %v334_v43, %v333_v39  ;;  %v719_v42 = vld [vmem:[%s1228_s2 + $0x2] ss:$0 sm:$0xff] }
 0x24f   :  { %953 = vrot.lane.b32.xlu1 %v952_v47, %s1004_s0  ;;  %948 = vrot.lane.b32.xlu0 %v947_v48, %s1004_s0 }
 0x250   :  { %894 = vmatprep.subr.msk.bf16.mxu0 %vm893_vm14, %v892_v49 }
 0x251   :  { %897 = vmatpush3.bf16.xpose.msk.msra.mxu0 %vm893_vm14, %v892_v49 }
 0x252   :  { %900 = vmatprep.subr.msk.bf16.mxu0 %vm893_vm14, %v898_v54 }
 0x259   :  { %903 = vmatpush3.bf16.xpose.msk.msra.mxu0 %vm893_vm14, %v898_v54 }
 0x25a   :  { %906 = vmatprep.subr.msk.bf16.mxu0 %vm893_vm14, %v904_v50 }
 0x261   :  { %909 = vmatpush3.bf16.xpose.msk.msra.mxu0 %vm893_vm14, %v904_v50 }
 0x262   :  { %912 = vmatprep.subr.msk.bf16.mxu0 %vm893_vm14, %v910_v51 }
 0x269   :  { %915 = vmatpush3.bf16.xpose.msk.msra.mxu0 %vm893_vm14, %v910_v51 }
 0x26a   :  { %933 = vmatprep.subr.bf16.mxu0 %v932_v15 }
 0x270   :  { %828 = vmatmul.mubr.msk.f32.vlgmr.msra.gmra.mrb[2].mxu0 %vm24_vm0, %v1159_v6 }
 0x271   :  { %935 = vmatpush3.bf16.msra.mxu0 %v932_v15 }
 0x272   :  { %937 = vmatprep.subr.bf16.mxu0 %v936_v32 }
 0x275   :  { %939 = vmatpush3.bf16.msra.mxu0 %v936_v32 }
 0x2c1   :  { %v954_v55 = vpop.permute.xlu1 %953  ;;  %v949_v56 = vpop.permute.xlu0 %948 }
 0x2c2   :  { %v956_v57 = vunpack.i.h.bf16 %v954_v55  ;;  %v955_v58 = vunpack.i.l.bf16 %v954_v55  ;;  %v951_v59 = vunpack.i.h.bf16 %v949_v56  ;;  %v950_v60 = vunpack.i.l.bf16 %v949_v56 }
 0x2c4   :  { %v916_v61 = vpack.c.bf16 %v951_v59, %v950_v60  ;;  %v920_v62 = vpack.c.bf16 %v956_v57, %v955_v58 }
 0x2c6   :  { %917 = vmatprep.subr.bf16.mxu1 %v916_v61 }
 0x2c7   :  { %919 = vmatpush3.bf16.msra.mxu1 %v916_v61 }
 0x2c8   :  { %921 = vmatprep.subr.bf16.mxu1 %v920_v62 }
 0x2cb   :  { %923 = vmatpush3.bf16.msra.mxu1 %v920_v62 }
 0x343   :  { %v829_v4 = vpop.f32.mrb[2].mxu0 }
 0x344   :  { %v445_v5 = vadd.f32 %v829_v4, %v344_v2  ;;  %v439_v6 = vpop.f32.mrb[3].mxu0 }
 0x345   :  { %v440_v7 = vadd.f32 %v439_v6, %v343_v3 }
 0x346   :  { %v451_v12 = vsel %vm328_vm5, %v445_v5, -inf }
 0x347   :  { %452 = vmax.xlane.f32.xlu1 %v451_v12  ;;  %v448_v19 = vsel %vm328_vm5, %v440_v7, -inf }
 0x348   :  { %449 = vmax.xlane.f32.xlu0 %v448_v19 }
 0x358   :  { %963 = vrot.lane.b32.xlu1 %v962_v52, %s1004_s0 }
 0x35e   :  { %958 = vrot.lane.b32.xlu0 %v957_v53, %s1004_s0 }
 0x3d4   :  { %v453_v9 = vpop.xlane.xlu1 %452 }
 0x3d5   :  { %v455_v8 = vsub.f32 %v445_v5, %v453_v9  ;;  %v450_v10 = vpop.xlane.xlu0 %449 }
 0x3d6   :  { %v454_v11 = vsub.f32 %v440_v7, %v450_v10 }
 0x3d7   :  { %v458_v18 = vmul.f32 1.442695, %v455_v8 }
 0x3d8   :  { %v456_v20 = vmul.f32 1.442695, %v454_v11  ;;  %v964_v21 = vpop.permute.xlu1 %963 }
 0x3d9   :  { %v966_v22 = vunpack.i.h.bf16 %v964_v21  ;;  %v959_v23 = vpop.permute.xlu0 %958  ;;  %v965_v24 = vunpack.i.l.bf16 %v964_v21 }
 0x3da   :  { %971 = vpow2.f32 %v456_v20  ;;  %v961_v25 = vunpack.i.h.bf16 %v959_v23  ;;  %v960_v27 = vunpack.i.l.bf16 %v959_v23 }
 0x3db   :  { %973 = vpow2.f32 %v458_v18  ;;  %v928_v29 = vpack.c.bf16 %v966_v22, %v965_v24 }
 0x3dc   :  { %v924_v28 = vpack.c.bf16 %v961_v25, %v960_v27 }
 0x3de   :  { %925 = vmatprep.subr.bf16.mxu1 %v924_v28 }
 0x3df   :  { %927 = vmatpush3.bf16.msra.mxu1 %v924_v28 }
 0x3e0   :  { %929 = vmatprep.subr.bf16.mxu1 %v928_v29 }
 0x3e3   :  { %931 = vmatpush3.bf16.msra.mxu1 %v928_v29 }
 0x3e4   :  { %v972_v13 = vpop.eup %971 }
 0x3e5   :  { %v974_v16 = vpop.eup %973  ;;  %846 = vmatprep.mubr.msk.f32.mxu1 %vm328_vm5, %v972_v13 }
 0x3e6   :  { %847 = vmatmul.mubr.msk.f32.vlgmr.msra.gmra.mrb[4].mxu1 %vm328_vm5, %v974_v16 }
 0x4b9   :  { %v848_v31 = vpop.f32.mrb[4].mxu1 }
 0x4ba   :  { %v566_v33 = vmax.f32 %v848_v31, 1e-30  ;;  %v556_v34 = vpop.f32.mrb[5].mxu1 }
 0x4bb   :  { %v565_v35 = vmax.f32 %v556_v34, 1e-30 }
 0x4bc   :  { %975 = vrcp.f32 %v566_v33 }
 0x4bd   :  { %977 = vrcp.f32 %v565_v35 }
 0x4c6   :  { %v976_v36 = vpop.eup %975 }
 0x4c7   :  { %v978_v37 = vpop.eup %977  ;;  %573 = vrot.lane.b32.xlu1 %v976_v36, %s1004_s0 }
 0x4c8   :  { %571 = vrot.lane.b32.xlu0 %v978_v37, %s1004_s0 }
 0x539   :  { %v574_v38 = vpop.permute.xlu1 %573 }
 0x53a   :  { %v572_v39 = vpop.permute.xlu0 %571  ;;  %v578_v41 = vmul.f32 %v848_v31, %v574_v38 }
 0x53b   :  { %v577_v40 = vmul.f32 %v572_v39, %v556_v34 }
 0x53d   :  { %857 = vmatprep.mubr.msk.f32.mxu0 %vm24_vm0, %v577_v40 }
 0x53e   :  { %858 = vmatmul.mubr.msk.f32.vlgmr.msra.gmra.mrb[4].mxu0 %vm24_vm0, %v578_v41 }
 0x611   :  { %v859_v43 = vpop.f32.mrb[4].mxu0 }
 0x612   :  { %v666_v44 = vadd.f32 %v859_v43, %v719_v42  ;;  %v660_v45 = vpop.f32.mrb[5].mxu0 }
 0x613   :  { %v661_v46 = vadd.f32 %v719_v42, %v660_v45 }
 0x614   :  { %670 = vst.msk [vmem:[#allocation2 + $0x8] sm:$0xff] %vm24_vm0, %v666_v44 }
 0x615   :  { %669 = vst.msk [vmem:[#allocation2] sm:$0xff] %vm24_vm0, %v661_v46 }
 0x616   :  { %990 = shalt.err (!%p987_p4)
}
 0x617   :  { %s991_s17 = scalar_lea.hbm %s1230_s4, 256 }
 0x618   :  { %p992_p5 = scmp.ne.s32.totalorder %s1230_s4, %s991_s17  ;;  %p995_p6 = scmp.lt.u32.totalorder %s991_s17, %s1230_s4 }
 0x61a   :  { %p997_p7 = pnand %p995_p6, %p992_p5 }
 0x61c   :  { %1000 = shalt.err (!%p997_p7)
}
 0x61d   :  { %s1008_s22 = smov 128   ;;  %s1009_s23 = smov 8  }
 0x61e   :  { %682 = dma.vmem_to_hbm [thread:$0]  %s677_s14, 256, %s1230_s4, [#allocation3], %s1008_s22, %s1008_s22, %s1009_s23  }
 0x61f   :  { %1001 = dma.done.wait [#allocation3], 256  }
 0x620   :  { %1002 = vsyncadd [#allocation3], 4294967040 }
 0x621   :  { %686 = vsyncpa [#allocation3], 1 }

</bundles_post_ra>
